<compile_context>
chip_gen: v7x
topology: tpu7x:2x2x1
jax: 0.10.0
libtpu: 0.0.40
codegen_flags: <defaults>
</compile_context>

<pallas_src>
import functools

import jax
import jax.numpy as jnp
from jax import lax
from jax.experimental import pallas as pl
from jax.experimental.pallas import tpu as pltpu

_NEG_BIG = -1e30                       # finite "-inf" (avoids inf-inf NaNs)
_PAD_LABEL = int(jnp.iinfo(jnp.int32).min)
_LANES = 128
_OPERAND_VMEM_BUDGET = 24 * 2 ** 20    # double-buffered feature blocks


def _round_up(x, m):
    return ((x + m - 1) // m) * m


def _fold_lanes(x):
    """(R, n*128) -> (R, 128) by summing 128-lane slabs (pure VPU adds,
    no cross-lane/XLU reduction)."""
    n = x.shape[1] // _LANES
    acc = x[:, :_LANES]
    for t in range(1, n):
        acc = acc + x[:, t * _LANES:(t + 1) * _LANES]
    return acc


def _supcon_kernel(f_row_ref, f_col_ref, lab_row_ref, lab_col_ref, cnt_ref,
                   out_ref, m_ref, l_ref, s_ref, *,
                   batch, row_tile, col_tile):
    i = pl.program_id(0)
    j = pl.program_id(1)
    n_col = pl.num_programs(1)

    @pl.when(j == 0)
    def _init():
        m_ref[...] = jnp.full_like(m_ref, _NEG_BIG)
        l_ref[...] = jnp.zeros_like(l_ref)
        s_ref[...] = jnp.zeros_like(s_ref)

    # (row_tile, col_tile) similarity tile.  1/temperature is already folded
    # into the operands; MXU accumulates in f32; no in-kernel transpose.
    contrast = lax.dot_general(
        f_row_ref[...], f_col_ref[...],
        dimension_numbers=(((1,), (1,)), ((), ())),
        preferred_element_type=jnp.float32)

    # ---- online softmax: running row max ----
    # Padded columns hold zero features -> contrast == 0 there.  Every valid
    # row's self-similarity (>= 0) is always part of the running max before /
    # while padded columns appear, so padded zeros can never raise the max and
    # no masking is needed for it.
    m_old = m_ref[...]
    m_new = jnp.maximum(m_old, jnp.max(contrast, axis=1, keepdims=True))
    alpha = jnp.exp(m_old - m_new)
    p = jnp.exp(contrast - m_new)
    m_ref[...] = m_new

    # Positive mask (the module's mask includes the diagonal).
    pos = lab_row_ref[...] == lab_col_ref[...]

    # Masking (diag exclusion from the denominator + padded-column exclusion)
    # is only needed on tiles intersecting the diagonal, plus the last column
    # tile when B % col_tile != 0.  Everything else takes the cheap path.
    row_start = i * row_tile
    col_start = j * col_tile
    diag_overlap = jnp.logical_and(row_start < col_start + col_tile,
                                   col_start < row_start + row_tile)
    if batch % col_tile != 0:
        need_mask = jnp.logical_or(diag_overlap, j == n_col - 1)
    else:
        need_mask = diag_overlap

    @pl.when(jnp.logical_not(need_mask))
    def _fast_path():
        l_ref[...] = l_ref[...] * alpha + _fold_lanes(p)
        s_ref[...] = s_ref[...] + _fold_lanes(jnp.where(pos, contrast, 0.0))

    @pl.when(need_mask)
    def _masked_path():
        row_ids = row_start + lax.broadcasted_iota(jnp.int32, (row_tile, 1), 0)
        col_ids = col_start + lax.broadcasted_iota(jnp.int32, (1, col_tile), 1)
        col_ok = col_ids < batch
        keep = jnp.logical_and(row_ids != col_ids, col_ok)    # denom: no diag/pad
        l_ref[...] = l_ref[...] * alpha + _fold_lanes(jnp.where(keep, p, 0.0))
        num_mask = jnp.logical_and(pos, col_ok)                # numerator keeps diag
        s_ref[...] = s_ref[...] + _fold_lanes(jnp.where(num_mask, contrast, 0.0))

    @pl.when(j == n_col - 1)
    def _finalize():
        row_ids = row_start + lax.broadcasted_iota(jnp.int32, (row_tile, 1), 0)
        row_valid = row_ids < batch
        l_sum = jnp.sum(l_ref[...], axis=1, keepdims=True)     # one XLU reduce / row tile
        s_sum = jnp.sum(s_ref[...], axis=1, keepdims=True)
        log_denom = jnp.log(l_sum + 1e-12)
        mean_log_prob_pos = s_sum / cnt_ref[...] - m_ref[...] - log_denom
        out_ref[...] = jnp.where(row_valid, -mean_log_prob_pos, 0.0)


def _choose_tiles(batch, d_pad, itemsize, row_tile, col_tile):
    b_ceil = _round_up(batch, _LANES)
    if col_tile is None:
        # >= 256 fills the 256-wide MXU on v6e/v7x; 128 only when the whole
        # batch fits a single 128-row tile.
        col_tile = min(256, b_ceil)
    if row_tile is None:
        row_tile = min(512, b_ceil)
        # Keep >= 2 row tiles when possible: the "parallel" row axis is what
        # shards across v7x's two TensorCores.
        if b_ceil >= 256 and row_tile >= b_ceil:
            row_tile = b_ceil // 2
        # VMEM guard: double-buffered feature blocks must stay well under the
        # scoped limit (v7x has only 64 MiB physical VMEM).
        while (row_tile > 128 and
               2 * (row_tile + col_tile) * d_pad * itemsize > _OPERAND_VMEM_BUDGET):
            row_tile = max(128, row_tile // 2)
    assert row_tile % 8 == 0 and col_tile % _LANES == 0
    return row_tile, col_tile


def supcon_loss(features, labels, temperature=0.07, *,
                compute_dtype=jnp.bfloat16, row_tile=None, col_tile=None):
    """SupConLoss forward.  features: (B, D) float; labels: (B,) int.

    Returns a scalar f32 loss matching the PyTorch module.  By default the
    features are streamed through the MXU as bf16 (f32 accumulation, all
    softmax math in f32); pass compute_dtype=jnp.float32 for full-f32 math.
    """
    B, D = features.shape
    D_pad = _round_up(D, _LANES)
    itemsize = jnp.dtype(compute_dtype).itemsize
    row_tile, col_tile = _choose_tiles(B, D_pad, itemsize, row_tile, col_tile)

    n_row = -(-B // row_tile)
    n_col = -(-B // col_tile)
    B_pad = max(n_row * row_tile, n_col * col_tile)

    # Fold 1/temperature into the operands (scale^2 == 1/T) and cast once to
    # the streaming dtype; padded rows/cols are zero.
    scale = float(temperature) ** -0.5
    f = (features.astype(jnp.float32) * scale).astype(compute_dtype)
    f = jnp.pad(f, ((0, B_pad - B), (0, D_pad - D)))

    lab = jnp.pad(labels.astype(jnp.int32), (0, B_pad - B),
                  constant_values=_PAD_LABEL)
    lab_row = lab.reshape(B_pad, 1)
    lab_col = lab.reshape(1, B_pad)

    # Per-row positive counts = mask.sum(1) of the module (diagonal included):
    # O(B log B) sort + searchsorted, no BxB mask materialization.
    lab_i32 = labels.astype(jnp.int32)
    lab_sorted = jnp.sort(lab_i32)
    cnt = (jnp.searchsorted(lab_sorted, lab_i32, side="right")
           - jnp.searchsorted(lab_sorted, lab_i32, side="left")).astype(jnp.float32)
    cnt = jnp.pad(cnt, (0, B_pad - B), constant_values=1.0).reshape(B_pad, 1)

    grid = (n_row, n_col)

    # Explicit VMEM budget (raise above v5e's 16 MiB default, cap for v7x).
    feat_vmem = 2 * (row_tile + col_tile) * D_pad * itemsize
    scratch_vmem = (row_tile + 2 * row_tile * _LANES) * 4
    small_vmem = 2 * (3 * row_tile * 4 + col_tile * 4)
    vmem_limit = int(max(32 * 2 ** 20,
                         min(48 * 2 ** 20,
                             2 * (feat_vmem + scratch_vmem + small_vmem))))

    rows_total = n_row * row_tile
    cols_total = n_col * col_tile
    cost = pl.CostEstimate(
        flops=2 * rows_total * cols_total * D_pad + 10 * rows_total * cols_total,
        transcendentals=rows_total * cols_total + 4 * rows_total,
        bytes_accessed=(rows_total * D_pad * itemsize                # row operand, once
                        + n_row * cols_total * D_pad * itemsize      # col operand re-streamed
                        + rows_total * 12 + cols_total * 4),
    )

    out = pl.pallas_call(
        functools.partial(_supcon_kernel, batch=B,
                          row_tile=row_tile, col_tile=col_tile),
        out_shape=jax.ShapeDtypeStruct((rows_total, 1), jnp.float32),
        grid_spec=pltpu.PrefetchScalarGridSpec(
            num_scalar_prefetch=0,
            grid=grid,
            in_specs=[
                pl.BlockSpec((row_tile, D_pad), lambda i, j: (i, 0)),  # row feats
                pl.BlockSpec((col_tile, D_pad), lambda i, j: (j, 0)),  # col feats
                pl.BlockSpec((row_tile, 1), lambda i, j: (i, 0)),      # row labels
                pl.BlockSpec((1, col_tile), lambda i, j: (0, j)),      # col labels
                pl.BlockSpec((row_tile, 1), lambda i, j: (i, 0)),      # pos counts
            ],
            out_specs=pl.BlockSpec((row_tile, 1), lambda i, j: (i, 0)),
            scratch_shapes=[
                pltpu.VMEM((row_tile, 1), jnp.float32),        # running max m
                pltpu.VMEM((row_tile, _LANES), jnp.float32),   # lane-partial denom l
                pltpu.VMEM((row_tile, _LANES), jnp.float32),   # lane-partial numer s
            ],
        ),
        compiler_params=pltpu.CompilerParams(
            dimension_semantics=("parallel", "arbitrary"),
            vmem_limit_bytes=vmem_limit),
        cost_estimate=cost,
    )(f, f, lab_row, lab_col, cnt)

    # Rows >= B are exactly 0; mean over the true batch size.
    return jnp.sum(out) / B


# ----------------------------- references ----------------------------------

def _reference_from_contrast(contrast, labels):
    # Pure-JAX mirror of the PyTorch module, given a precomputed contrast.
    B = contrast.shape[0]
    mask = (labels.reshape(-1, 1) == labels.reshape(1, -1)).astype(jnp.float32)
    logits = contrast - jnp.max(contrast, axis=1, keepdims=True)
    exp_logits = jnp.exp(logits) * (1.0 - jnp.eye(B, dtype=jnp.float32))
    log_prob = logits - jnp.log(jnp.sum(exp_logits, axis=1, keepdims=True) + 1e-12)
    mean_log_prob_pos = jnp.sum(mask * log_prob, axis=1) / jnp.sum(mask, axis=1)
    return -jnp.mean(mean_log_prob_pos)


def _reference_supcon(features, labels, temperature=0.07):
    f = features.astype(jnp.float32)
    contrast = jnp.matmul(f, f.T, precision=lax.Precision.HIGHEST) / temperature
    return _reference_from_contrast(contrast, labels)


if __name__ == "__main__":
    key = jax.random.PRNGKey(0)
    kf, kl = jax.random.split(key)

    B, D = 8, 32
    temperature = 0.07
    features = jax.random.normal(kf, (B, D), dtype=jnp.float32)
    # L2-normalize (typical SupCon usage; kernel does not rely on it).
    features = features / jnp.linalg.norm(features, axis=1, keepdims=True)
    labels = jax.random.randint(kl, (B,), 0, 3, dtype=jnp.int32)

    ref = _reference_supcon(features, labels, temperature)

    # 1) f32 compute path — faithful to the PyTorch module's numerics.
    loss_f32 = jax.block_until_ready(
        supcon_loss(features, labels, temperature, compute_dtype=jnp.float32))
    assert jnp.allclose(loss_f32, ref, rtol=1e-3, atol=1e-3), (loss_f32, ref)

    # 2) default (perf) path — bf16-streamed operands, f32 accumulation.
    loss_bf16 = jax.block_until_ready(
        supcon_loss(features, labels, temperature))
    #    tight check against the same math on the bf16-rounded operands ...
    scale = temperature ** -0.5
    f_q = (features * scale).astype(jnp.bfloat16).astype(jnp.float32)
    ref_q = _reference_from_contrast(
        jnp.matmul(f_q, f_q.T, precision=lax.Precision.HIGHEST), labels)
    assert jnp.allclose(loss_bf16, ref_q, rtol=1e-3, atol=1e-3), (loss_bf16, ref_q)
    #    ... and a loose sanity check against full-f32 semantics.
    assert jnp.allclose(loss_bf16, ref, rtol=1e-1, atol=5e-1), (loss_bf16, ref)

    print("KERNEL_OK")
</pallas_src>

<mosaic_0001>
module attributes {stable_mosaic.version = 11 : i64} {
  func.func @_supcon_kernel(%arg0: i32, %arg1: i32, %arg2: memref<128x128xf32, #tpu.memory_space<vmem>>, %arg3: memref<128x128xf32, #tpu.memory_space<vmem>>, %arg4: memref<128x1xi32, #tpu.memory_space<vmem>>, %arg5: memref<1x128xi32, #tpu.memory_space<vmem>>, %arg6: memref<128x1xf32, #tpu.memory_space<vmem>>, %arg7: memref<128x1xf32, #tpu.memory_space<vmem>>, %arg8: memref<128x1xf32, #tpu.memory_space<vmem>>, %arg9: memref<128x128xf32, #tpu.memory_space<vmem>>, %arg10: memref<128x128xf32, #tpu.memory_space<vmem>>) attributes {dimension_semantics = [#tpu.dimension_semantics<parallel>, #tpu.dimension_semantics<arbitrary>], iteration_bounds = array<i64: 1, 1>, scalar_prefetch = 0 : i64, scratch_operands = 3 : i64, tpu.core_type = #tpu.core_type<tc>, window_params = [{transform_indices = @transform_0, window_bounds = array<i64: 128, 128>}, {transform_indices = @transform_1, window_bounds = array<i64: 128, 128>}, {transform_indices = @transform_2, window_bounds = array<i64: 128, 1>}, {transform_indices = @transform_3, window_bounds = array<i64: 1, 128>}, {transform_indices = @transform_4, window_bounds = array<i64: 128, 1>}, {transform_indices = @transform_5, window_bounds = array<i64: 128, 1>}]} {
    %c0_i32 = arith.constant 0 : i32
    %0 = arith.cmpi eq, %arg1, %c0_i32 : i32
    %1 = arith.extui %0 : i1 to i32
    %c0_i32_0 = arith.constant 0 : i32
    %2 = arith.cmpi ne, %1, %c0_i32_0 : i32
    scf.if %2 {
      %cst_21 = arith.constant -1.000000e+30 : f32
      %38 = vector.broadcast %cst_21 : f32 to vector<128x1xf32>
      %c0_22 = arith.constant 0 : index
      %c0_23 = arith.constant 0 : index
      %39 = vector.load %arg8[%c0_22, %c0_23] : memref<128x1xf32, #tpu.memory_space<vmem>>, vector<128x1xf32>
      tpu.vector_store %arg8[%c0_22, %c0_23], %38 {strides = array<i32>} : memref<128x1xf32, #tpu.memory_space<vmem>>, vector<128x1xf32>,
      %cst_24 = arith.constant 0.000000e+00 : f32
      %40 = vector.broadcast %cst_24 : f32 to vector<128x128xf32>
      %c0_25 = arith.constant 0 : index
      %c0_26 = arith.constant 0 : index
      %41 = vector.load %arg9[%c0_25, %c0_26] : memref<128x128xf32, #tpu.memory_space<vmem>>, vector<128x128xf32>
      tpu.vector_store %arg9[%c0_25, %c0_26], %40 {strides = array<i32>} : memref<128x128xf32, #tpu.memory_space<vmem>>, vector<128x128xf32>,
      %cst_27 = arith.constant 0.000000e+00 : f32
      %42 = vector.broadcast %cst_27 : f32 to vector<128x128xf32>
      %c0_28 = arith.constant 0 : index
      %c0_29 = arith.constant 0 : index
      %43 = vector.load %arg10[%c0_28, %c0_29] : memref<128x128xf32, #tpu.memory_space<vmem>>, vector<128x128xf32>
      tpu.vector_store %arg10[%c0_28, %c0_29], %42 {strides = array<i32>} : memref<128x128xf32, #tpu.memory_space<vmem>>, vector<128x128xf32>,
    } else {
    }
    %c0 = arith.constant 0 : index
    %c0_1 = arith.constant 0 : index
    %3 = vector.load %arg2[%c0, %c0_1] : memref<128x128xf32, #tpu.memory_space<vmem>>, vector<128x128xf32>
    %c0_2 = arith.constant 0 : index
    %c0_3 = arith.constant 0 : index
    %4 = vector.load %arg3[%c0_2, %c0_3] : memref<128x128xf32, #tpu.memory_space<vmem>>, vector<128x128xf32>
    %cst = arith.constant dense<0.000000e+00> : vector<128x128xf32>
    %5 = tpu.matmul %3, %4, %cst {dimension_numbers = #tpu.dot_dimension_numbers<[1], [1], [0], [0], [0, 0, 1, 0], [], []>} : vector<128x128xf32>, vector<128x128xf32>, vector<128x128xf32> -> vector<128x128xf32>
    %c0_4 = arith.constant 0 : index
    %c0_5 = arith.constant 0 : index
    %6 = vector.load %arg8[%c0_4, %c0_5] : memref<128x1xf32, #tpu.memory_space<vmem>>, vector<128x1xf32>
    %cst_6 = arith.constant dense<0xFF800000> : vector<128xf32>
    %7 = vector.multi_reduction <maximumf>, %5, %cst_6 [1] : vector<128x128xf32> to vector<128xf32>
    %8 = vector.shape_cast %7 : vector<128xf32> to vector<128x1xf32>
    %9 = arith.maximumf %6, %8 : vector<128x1xf32>
    %10 = arith.subf %6, %9 : vector<128x1xf32>
    %11 = math.exp %10 : vector<128x1xf32>
    %12 = vector.broadcast %9 : vector<128x1xf32> to vector<128x128xf32>
    %13 = arith.subf %5, %12 : vector<128x128xf32>
    %14 = math.exp %13 : vector<128x128xf32>
    %c0_7 = arith.constant 0 : index
    %c0_8 = arith.constant 0 : index
    %15 = vector.load %arg8[%c0_7, %c0_8] : memref<128x1xf32, #tpu.memory_space<vmem>>, vector<128x1xf32>
    tpu.vector_store %arg8[%c0_7, %c0_8], %9 {strides = array<i32>} : memref<128x1xf32, #tpu.memory_space<vmem>>, vector<128x1xf32>,
    %c0_9 = arith.constant 0 : index
    %c0_10 = arith.constant 0 : index
    %16 = vector.load %arg4[%c0_9, %c0_10] : memref<128x1xi32, #tpu.memory_space<vmem>>, vector<128x1xi32>
    %c0_11 = arith.constant 0 : index
    %c0_12 = arith.constant 0 : index
    %17 = vector.load %arg5[%c0_11, %c0_12] : memref<1x128xi32, #tpu.memory_space<vmem>>, vector<1x128xi32>
    %18 = vector.broadcast %16 : vector<128x1xi32> to vector<128x128xi32>
    %19 = vector.broadcast %17 : vector<1x128xi32> to vector<128x128xi32>
    %20 = arith.cmpi eq, %18, %19 : vector<128x128xi32>
    %c128_i32 = arith.constant 128 : i32
    %21 = arith.muli %arg0, %c128_i32 : i32
    %c128_i32_13 = arith.constant 128 : i32
    %22 = arith.muli %arg1, %c128_i32_13 : i32
    %c128_i32_14 = arith.constant 128 : i32
    %23 = arith.addi %22, %c128_i32_14 : i32
    %24 = arith.cmpi slt, %21, %23 : i32
    %c128_i32_15 = arith.constant 128 : i32
    %25 = arith.addi %21, %c128_i32_15 : i32
    %26 = arith.cmpi slt, %22, %25 : i32
    %27 = arith.andi %24, %26 : i1
    %c0_i32_16 = arith.constant 0 : i32
    %28 = arith.cmpi eq, %arg1, %c0_i32_16 : i32
    %29 = arith.ori %27, %28 : i1
    %true = arith.constant true
    %30 = arith.xori %29, %true : i1
    %31 = arith.extui %30 : i1 to i32
    %c0_i32_17 = arith.constant 0 : i32
    %32 = arith.cmpi ne, %31, %c0_i32_17 : i32
    scf.if %32 {
      %c0_21 = arith.constant 0 : index
      %c0_22 = arith.constant 0 : index
      %38 = vector.load %arg9[%c0_21, %c0_22] : memref<128x128xf32, #tpu.memory_space<vmem>>, vector<128x128xf32>
      %39 = vector.broadcast %11 : vector<128x1xf32> to vector<128x128xf32>
      %40 = arith.mulf %38, %39 : vector<128x128xf32>
      %41 = arith.addf %40, %14 : vector<128x128xf32>
      %c0_23 = arith.constant 0 : index
      %c0_24 = arith.constant 0 : index
      %42 = vector.load %arg9[%c0_23, %c0_24] : memref<128x128xf32, #tpu.memory_space<vmem>>, vector<128x128xf32>
      tpu.vector_store %arg9[%c0_23, %c0_24], %41 {strides = array<i32>} : memref<128x128xf32, #tpu.memory_space<vmem>>, vector<128x128xf32>,
      %c0_25 = arith.constant 0 : index
      %c0_26 = arith.constant 0 : index
      %43 = vector.load %arg10[%c0_25, %c0_26] : memref<128x128xf32, #tpu.memory_space<vmem>>, vector<128x128xf32>
      %cst_27 = arith.constant 0.000000e+00 : f32
      %44 = vector.broadcast %cst_27 : f32 to vector<128x128xf32>
      %45 = arith.select %20, %5, %44 : vector<128x128xi1>, vector<128x128xf32>
      %46 = arith.addf %43, %45 : vector<128x128xf32>
      %c0_28 = arith.constant 0 : index
      %c0_29 = arith.constant 0 : index
      %47 = vector.load %arg10[%c0_28, %c0_29] : memref<128x128xf32, #tpu.memory_space<vmem>>, vector<128x128xf32>
      tpu.vector_store %arg10[%c0_28, %c0_29], %46 {strides = array<i32>} : memref<128x128xf32, #tpu.memory_space<vmem>>, vector<128x128xf32>,
    } else {
    }
    %33 = arith.extui %29 : i1 to i32
    %c0_i32_18 = arith.constant 0 : i32
    %34 = arith.cmpi ne, %33, %c0_i32_18 : i32
    scf.if %34 {
      %38 = tpu.iota {dimensions = array<i32: 0>} : vector<128x1xi32>
      %39 = vector.broadcast %21 : i32 to vector<128x1xi32>
      %40 = arith.addi %39, %38 : vector<128x1xi32>
      %41 = tpu.iota {dimensions = array<i32: 1>} : vector<1x128xi32>
      %42 = vector.broadcast %22 : i32 to vector<1x128xi32>
      %43 = arith.addi %42, %41 : vector<1x128xi32>
      %c8_i32 = arith.constant 8 : i32
      %44 = vector.broadcast %c8_i32 : i32 to vector<1x128xi32>
      %45 = arith.cmpi slt, %43, %44 : vector<1x128xi32>
      %46 = vector.broadcast %40 : vector<128x1xi32> to vector<128x128xi32>
      %47 = vector.broadcast %43 : vector<1x128xi32> to vector<128x128xi32>
      %48 = arith.cmpi ne, %46, %47 : vector<128x128xi32>
      %49 = vector.broadcast %45 : vector<1x128xi1> to vector<128x128xi1>
      %50 = arith.andi %48, %49 : vector<128x128xi1>
      %c0_21 = arith.constant 0 : index
      %c0_22 = arith.constant 0 : index
      %51 = vector.load %arg9[%c0_21, %c0_22] : memref<128x128xf32, #tpu.memory_space<vmem>>, vector<128x128xf32>
      %52 = vector.broadcast %11 : vector<128x1xf32> to vector<128x128xf32>
      %53 = arith.mulf %51, %52 : vector<128x128xf32>
      %cst_23 = arith.constant 0.000000e+00 : f32
      %54 = vector.broadcast %cst_23 : f32 to vector<128x128xf32>
      %55 = arith.select %50, %14, %54 : vector<128x128xi1>, vector<128x128xf32>
      %56 = arith.addf %53, %55 : vector<128x128xf32>
      %c0_24 = arith.constant 0 : index
      %c0_25 = arith.constant 0 : index
      %57 = vector.load %arg9[%c0_24, %c0_25] : memref<128x128xf32, #tpu.memory_space<vmem>>, vector<128x128xf32>
      tpu.vector_store %arg9[%c0_24, %c0_25], %56 {strides = array<i32>} : memref<128x128xf32, #tpu.memory_space<vmem>>, vector<128x128xf32>,
      %58 = vector.broadcast %45 : vector<1x128xi1> to vector<128x128xi1>
      %59 = arith.andi %20, %58 : vector<128x128xi1>
      %c0_26 = arith.constant 0 : index
      %c0_27 = arith.constant 0 : index
      %60 = vector.load %arg10[%c0_26, %c0_27] : memref<128x128xf32, #tpu.memory_space<vmem>>, vector<128x128xf32>
      %cst_28 = arith.constant 0.000000e+00 : f32
      %61 = vector.broadcast %cst_28 : f32 to vector<128x128xf32>
      %62 = arith.select %59, %5, %61 : vector<128x128xi1>, vector<128x128xf32>
      %63 = arith.addf %60, %62 : vector<128x128xf32>
      %c0_29 = arith.constant 0 : index
      %c0_30 = arith.constant 0 : index
      %64 = vector.load %arg10[%c0_29, %c0_30] : memref<128x128xf32, #tpu.memory_space<vmem>>, vector<128x128xf32>
      tpu.vector_store %arg10[%c0_29, %c0_30], %63 {strides = array<i32>} : memref<128x128xf32, #tpu.memory_space<vmem>>, vector<128x128xf32>,
    } else {
    }
    %c0_i32_19 = arith.constant 0 : i32
    %35 = arith.cmpi eq, %arg1, %c0_i32_19 : i32
    %36 = arith.extui %35 : i1 to i32
    %c0_i32_20 = arith.constant 0 : i32
    %37 = arith.cmpi ne, %36, %c0_i32_20 : i32
    scf.if %37 {
      %38 = tpu.iota {dimensions = array<i32: 0>} : vector<128x1xi32>
      %39 = vector.broadcast %21 : i32 to vector<128x1xi32>
      %40 = arith.addi %39, %38 : vector<128x1xi32>
      %c8_i32 = arith.constant 8 : i32
      %41 = vector.broadcast %c8_i32 : i32 to vector<128x1xi32>
      %42 = arith.cmpi slt, %40, %41 : vector<128x1xi32>
      %c0_21 = arith.constant 0 : index
      %c0_22 = arith.constant 0 : index
      %43 = vector.load %arg9[%c0_21, %c0_22] : memref<128x128xf32, #tpu.memory_space<vmem>>, vector<128x128xf32>
      %cst_23 = arith.constant dense<0.000000e+00> : vector<128xf32>
      %44 = vector.multi_reduction <add>, %43, %cst_23 [1] : vector<128x128xf32> to vector<128xf32>
      %45 = vector.shape_cast %44 : vector<128xf32> to vector<128x1xf32>
      %c0_24 = arith.constant 0 : index
      %c0_25 = arith.constant 0 : index
      %46 = vector.load %arg10[%c0_24, %c0_25] : memref<128x128xf32, #tpu.memory_space<vmem>>, vector<128x128xf32>
      %cst_26 = arith.constant dense<0.000000e+00> : vector<128xf32>
      %47 = vector.multi_reduction <add>, %46, %cst_26 [1] : vector<128x128xf32> to vector<128xf32>
      %48 = vector.shape_cast %47 : vector<128xf32> to vector<128x1xf32>
      %cst_27 = arith.constant 9.99999996E-13 : f32
      %49 = vector.broadcast %cst_27 : f32 to vector<128x1xf32>
      %50 = arith.addf %45, %49 : vector<128x1xf32>
      %51 = math.log %50 : vector<128x1xf32>
      %c0_28 = arith.constant 0 : index
      %c0_29 = arith.constant 0 : index
      %52 = vector.load %arg6[%c0_28, %c0_29] : memref<128x1xf32, #tpu.memory_space<vmem>>, vector<128x1xf32>
      %53 = arith.divf %48, %52 : vector<128x1xf32>
      %c0_30 = arith.constant 0 : index
      %c0_31 = arith.constant 0 : index
      %54 = vector.load %arg8[%c0_30, %c0_31] : memref<128x1xf32, #tpu.memory_space<vmem>>, vector<128x1xf32>
      %55 = arith.subf %53, %54 : vector<128x1xf32>
      %56 = arith.subf %55, %51 : vector<128x1xf32>
      %cst_32 = arith.constant 0.000000e+00 : f32
      %57 = vector.broadcast %cst_32 : f32 to vector<128x1xf32>
      %58 = arith.subf %57, %56 : vector<128x1xf32>
      %cst_33 = arith.constant 0.000000e+00 : f32
      %59 = vector.broadcast %cst_33 : f32 to vector<128x1xf32>
      %60 = arith.select %42, %58, %59 : vector<128x1xi1>, vector<128x1xf32>
      %c0_34 = arith.constant 0 : index
      %c0_35 = arith.constant 0 : index
      %61 = vector.load %arg7[%c0_34, %c0_35] : memref<128x1xf32, #tpu.memory_space<vmem>>, vector<128x1xf32>
      tpu.vector_store %arg7[%c0_34, %c0_35], %60 {strides = array<i32>} : memref<128x1xf32, #tpu.memory_space<vmem>>, vector<128x1xf32>,
    } else {
    }
    return
  }
  func.func @transform_0(%arg0: i32, %arg1: i32) -> (i32, i32) {
    %c0_i32 = arith.constant 0 : i32
    %c0_i32_0 = arith.constant 0 : i32
    return %arg0, %c0_i32 : i32, i32
  }
  func.func @transform_1(%arg0: i32, %arg1: i32) -> (i32, i32) {
    %c0_i32 = arith.constant 0 : i32
    %c0_i32_0 = arith.constant 0 : i32
    return %arg1, %c0_i32 : i32, i32
  }
  func.func @transform_2(%arg0: i32, %arg1: i32) -> (i32, i32) {
    %c0_i32 = arith.constant 0 : i32
    %c0_i32_0 = arith.constant 0 : i32
    return %arg0, %c0_i32 : i32, i32
  }
  func.func @transform_3(%arg0: i32, %arg1: i32) -> (i32, i32) {
    %c0_i32 = arith.constant 0 : i32
    %c0_i32_0 = arith.constant 0 : i32
    return %c0_i32, %arg1 : i32, i32
  }
  func.func @transform_4(%arg0: i32, %arg1: i32) -> (i32, i32) {
    %c0_i32 = arith.constant 0 : i32
    %c0_i32_0 = arith.constant 0 : i32
    return %arg0, %c0_i32 : i32, i32
  }
  func.func @transform_5(%arg0: i32, %arg1: i32) -> (i32, i32) {
    %c0_i32 = arith.constant 0 : i32
    %c0_i32_0 = arith.constant 0 : i32
    return %arg0, %c0_i32 : i32, i32
  }
}

</mosaic_0001>

<bundles_post_ra>
// kernel: tpu_custom_call.1
= control target key start
LH: loop header
LB: loop body
LE: loop exit
PB: predicated region body
PF: predicated region fallthrough
CT: control target
= control target key end

     0   :  { %vm24_vm0 = vcmask 7168   ;;  %v1623_v29 = vmov -1e+30   ;;  %v1624_v43 = vmov 0   ;;  %s1859_s1 = inlined_call_operand.vmem [shape: f32[128,128], index: 1, kind: input, shape index: {}]   ;;  %s1860_s0 = inlined_call_operand.vmem [shape: f32[128,128], index: 0, kind: input, shape index: {}]   ;;  %s1861_s2 = inlined_call_operand.vmem [shape: s32[128,1], index: 2, kind: input, shape index: {}]   ;;  %s1862_s3 = inlined_call_operand.vmem [shape: s32[1,128], index: 3, kind: input, shape index: {}]   ;;  %s1863_s5 = inlined_call_operand.vmem [shape: f32[128,1], index: 5, kind: output, shape index: {}]   ;;  %s1864_s4 = inlined_call_operand.vmem [shape: f32[128,1], index: 4, kind: input, shape index: {}]  }
   0x1   :  { %v89_v0 = vld [vmem:[%s1859_s1] sm:$0xff]  ;;  %v90_v1 = vld [vmem:[%s1859_s1 + $0x8] sm:$0xff]  ;;  %v91_v2 = vld [vmem:[%s1859_s1 + $0x10] sm:$0xff]  ;;  %25 = vst.msk [vmem:[#allocation2] sm:$0xff] %vm24_vm0, %v1623_v29  ;;  %1613 = vset.pattern.permute.xlu0 %v1624_v43  ;;  %1614 = vset.pattern.permute.xlu1 %v1624_v43 }
   0x2   :  { %v1562_v3 = vpack.c.bf16 %v90_v1, %v89_v0  ;;  %v92_v4 = vld [vmem:[%s1859_s1 + $0x18] sm:$0xff]  ;;  %v73_v6 = vld [vmem:[%s1860_s0] sm:$0xff]  ;;  %v94_v8 = vld [vmem:[%s1859_s1 + $0x28] sm:$0xff]  ;;  %26 = vst.msk [vmem:[#allocation2 + $0x8] sm:$0xff] %vm24_vm0, %v1623_v29  ;;  %v604_v1 = vlaneseq }
   0x3   :  { %v1566_v5 = vpack.c.bf16 %v92_v4, %v91_v2  ;;  %v93_v7 = vld [vmem:[%s1859_s1 + $0x20] sm:$0xff]  ;;  %1538 = vmatprep.mubr.f32.mxu0 %v73_v6  ;;  %v95_v10 = vld [vmem:[%s1859_s1 + $0x30] sm:$0xff]  ;;  %v96_v11 = vld [vmem:[%s1859_s1 + $0x38] sm:$0xff]  ;;  %27 = vst.msk [vmem:[#allocation2 + $0x10] sm:$0xff] %vm24_vm0, %v1623_v29 }
   0x4   :  { %1563 = vmatprep.subr.bf16.mxu0 %v1562_v3  ;;  %1594 = vmatprep.subr.bf16.mxu1 %v1562_v3  ;;  %v1570_v9 = vpack.c.bf16 %v94_v8, %v93_v7  ;;  %v1574_v12 = vpack.c.bf16 %v96_v11, %v95_v10  ;;  %v97_v13 = vld [vmem:[%s1859_s1 + $0x40] sm:$0xff]  ;;  %v98_v14 = vld [vmem:[%s1859_s1 + $0x48] sm:$0xff]  ;;  %v99_v16 = vld [vmem:[%s1859_s1 + $0x50] sm:$0xff]  ;;  %28 = vst.msk [vmem:[#allocation2 + $0x18] sm:$0xff] %vm24_vm0, %v1623_v29  ;;  %v605_v10 = vshrl.u32 %v604_v1, 7 }
   0x5   :  { %1565 = vmatpush3.bf16.xpose.msra.mxu0 %v1562_v3  ;;  %1602 = vmatpush3.bf16.xpose.msra.mxu1 %v1562_v3  ;;  %v1578_v15 = vpack.c.bf16 %v98_v14, %v97_v13  ;;  %v100_v17 = vld [vmem:[%s1859_s1 + $0x58] sm:$0xff]  ;;  %v101_v19 = vld [vmem:[%s1859_s1 + $0x60] sm:$0xff]  ;;  %v102_v20 = vld [vmem:[%s1859_s1 + $0x68] sm:$0xff]  ;;  %29 = vst.msk [vmem:[#allocation2 + $0x20] sm:$0xff] %vm24_vm0, %v1623_v29  ;;  %v639_v3 = vand.u32 127, %v604_v1 }
   0x6   :  { %1567 = vmatprep.subr.bf16.mxu0 %v1566_v5  ;;  %1595 = vmatprep.subr.bf16.mxu1 %v1566_v5  ;;  %v1582_v18 = vpack.c.bf16 %v100_v17, %v99_v16  ;;  %v1586_v21 = vpack.c.bf16 %v102_v20, %v101_v19  ;;  %v103_v22 = vld [vmem:[%s1859_s1 + $0x70] sm:$0xff]  ;;  %v104_v23 = vld [vmem:[%s1859_s1 + $0x78] sm:$0xff]  ;;  %v74_v25 = vld [vmem:[%s1860_s0 + $0x8] sm:$0xff]  ;;  %30 = vst.msk [vmem:[#allocation2 + $0x28] sm:$0xff] %vm24_vm0, %v1623_v29 }
   0x7   :  { %v1590_v24 = vpack.c.bf16 %v104_v23, %v103_v22  ;;  %v75_v26 = vld [vmem:[%s1860_s0 + $0x10] sm:$0xff]  ;;  %v76_v27 = vld [vmem:[%s1860_s0 + $0x18] sm:$0xff]  ;;  %v77_v28 = vld [vmem:[%s1860_s0 + $0x20] sm:$0xff]  ;;  %31 = vst.msk [vmem:[#allocation2 + $0x30] sm:$0xff] %vm24_vm0, %v1623_v29  ;;  %vm642_vm2 = vcmp.lt.s32.totalorder %v639_v3, 8  ;;  %vm643_vm4 = vcmp.ne.s32.totalorder %v605_v10, %v639_v3 }
   0x8   :  { %32 = vst.msk [vmem:[#allocation2 + $0x38] sm:$0xff] %vm24_vm0, %v1623_v29  ;;  %33 = vst.msk [vmem:[#allocation2 + $0x40] sm:$0xff] %vm24_vm0, %v1623_v29  ;;  %v81_v30 = vld [vmem:[%s1860_s0 + $0x40] sm:$0xff]  ;;  %v82_v31 = vld [vmem:[%s1860_s0 + $0x48] sm:$0xff] }
   0x9   :  { %34 = vst.msk [vmem:[#allocation2 + $0x48] sm:$0xff] %vm24_vm0, %v1623_v29  ;;  %35 = vst.msk [vmem:[#allocation2 + $0x50] sm:$0xff] %vm24_vm0, %v1623_v29  ;;  %v83_v32 = vld [vmem:[%s1860_s0 + $0x50] sm:$0xff]  ;;  %v78_v33 = vld [vmem:[%s1860_s0 + $0x28] sm:$0xff]  ;;  %1550 = vmatprep.mubr.f32.mxu1 %v81_v30 }
   0xa   :  { %36 = vst.msk [vmem:[#allocation2 + $0x58] sm:$0xff] %vm24_vm0, %v1623_v29  ;;  %37 = vst.msk [vmem:[#allocation2 + $0x60] sm:$0xff] %vm24_vm0, %v1623_v29  ;;  %v79_v34 = vld [vmem:[%s1860_s0 + $0x30] sm:$0xff]  ;;  %v84_v35 = vld [vmem:[%s1860_s0 + $0x58] sm:$0xff] }
   0xb   :  { %38 = vst.msk [vmem:[#allocation2 + $0x68] sm:$0xff] %vm24_vm0, %v1623_v29  ;;  %39 = vst.msk [vmem:[#allocation2 + $0x70] sm:$0xff] %vm24_vm0, %v1623_v29  ;;  %v85_v36 = vld [vmem:[%s1860_s0 + $0x60] sm:$0xff]  ;;  %v80_v37 = vld [vmem:[%s1860_s0 + $0x38] sm:$0xff] }
   0xc   :  { %40 = vst.msk [vmem:[#allocation2 + $0x78] sm:$0xff] %vm24_vm0, %v1623_v29  ;;  %v86_v38 = vld [vmem:[%s1860_s0 + $0x68] sm:$0xff]  ;;  %v87_v39 = vld [vmem:[%s1860_s0 + $0x70] sm:$0xff]  ;;  %v88_v40 = vld [vmem:[%s1860_s0 + $0x78] sm:$0xff] }
   0xd   :  { %1569 = vmatpush3.bf16.xpose.msra.mxu0 %v1566_v5  ;;  %1603 = vmatpush3.bf16.xpose.msra.mxu1 %v1566_v5  ;;  %v250_v44 = vld [vmem:[#allocation2] sm:$0xff]  ;;  %vm661_vm5 = vmand %vm643_vm4, %vm642_vm2  ;;  %v252_v29 = vld [vmem:[#allocation2 + $0x10] sm:$0xff] }
   0xe   :  { %1571 = vmatprep.subr.bf16.mxu0 %v1570_v9  ;;  %1596 = vmatprep.subr.bf16.mxu1 %v1570_v9  ;;  %v507_v50 = vld [vmem:[%s1861_s2] sm:$0xff] }
   0xf   :  { %v1473_v4 = vld [vmem:[%s1862_s3] ss:$0 sm:$0xff] }
  0x10   :  { %v260_v19 = vld [vmem:[#allocation2 + $0x50] sm:$0xff] }
  0x11   :  { %v262_v22 = vld [vmem:[#allocation2 + $0x60] sm:$0xff] }
  0x12   :  { %v263_v1 = vld [vmem:[#allocation2 + $0x68] sm:$0xff] }
  0x15   :  { %1573 = vmatpush3.bf16.xpose.msra.mxu0 %v1570_v9  ;;  %1604 = vmatpush3.bf16.xpose.msra.mxu1 %v1570_v9 }
  0x16   :  { %1575 = vmatprep.subr.bf16.mxu0 %v1574_v12  ;;  %1597 = vmatprep.subr.bf16.mxu1 %v1574_v12 }
  0x1d   :  { %1577 = vmatpush3.bf16.xpose.msra.mxu0 %v1574_v12  ;;  %1605 = vmatpush3.bf16.xpose.msra.mxu1 %v1574_v12  ;;  %v251_v12 = vld [vmem:[#allocation2 + $0x8] sm:$0xff] }
  0x1e   :  { %1579 = vmatprep.subr.bf16.mxu0 %v1578_v15  ;;  %1598 = vmatprep.subr.bf16.mxu1 %v1578_v15 }
  0x25   :  { %1581 = vmatpush3.bf16.xpose.msra.mxu0 %v1578_v15  ;;  %1606 = vmatpush3.bf16.xpose.msra.mxu1 %v1578_v15 }
  0x26   :  { %1583 = vmatprep.subr.bf16.mxu0 %v1582_v18  ;;  %1599 = vmatprep.subr.bf16.mxu1 %v1582_v18 }
  0x2d   :  { %1585 = vmatpush3.bf16.xpose.msra.mxu0 %v1582_v18  ;;  %1607 = vmatpush3.bf16.xpose.msra.mxu1 %v1582_v18  ;;  %v1625_v18 = vmov 0.0  }
  0x2e   :  { %1587 = vmatprep.subr.bf16.mxu0 %v1586_v21  ;;  %1600 = vmatprep.subr.bf16.mxu1 %v1586_v21  ;;  %1454 = vst.msk [vmem:[%s1863_s5 + $0x8] sm:$0xff] %vm24_vm0, %v1625_v18  ;;  %1455 = vst.msk [vmem:[%s1863_s5 + $0x10] sm:$0xff] %vm24_vm0, %v1625_v18 }
  0x2f   :  { %1456 = vst.msk [vmem:[%s1863_s5 + $0x18] sm:$0xff] %vm24_vm0, %v1625_v18  ;;  %1457 = vst.msk [vmem:[%s1863_s5 + $0x20] sm:$0xff] %vm24_vm0, %v1625_v18 }
  0x30   :  { %1458 = vst.msk [vmem:[%s1863_s5 + $0x28] sm:$0xff] %vm24_vm0, %v1625_v18  ;;  %1459 = vst.msk [vmem:[%s1863_s5 + $0x30] sm:$0xff] %vm24_vm0, %v1625_v18 }
  0x31   :  { %1460 = vst.msk [vmem:[%s1863_s5 + $0x38] sm:$0xff] %vm24_vm0, %v1625_v18  ;;  %1461 = vst.msk [vmem:[%s1863_s5 + $0x40] sm:$0xff] %vm24_vm0, %v1625_v18 }
  0x32   :  { %1462 = vst.msk [vmem:[%s1863_s5 + $0x48] sm:$0xff] %vm24_vm0, %v1625_v18  ;;  %1463 = vst.msk [vmem:[%s1863_s5 + $0x50] sm:$0xff] %vm24_vm0, %v1625_v18 }
  0x33   :  { %1464 = vst.msk [vmem:[%s1863_s5 + $0x58] sm:$0xff] %vm24_vm0, %v1625_v18  ;;  %1465 = vst.msk [vmem:[%s1863_s5 + $0x60] sm:$0xff] %vm24_vm0, %v1625_v18 }
  0x34   :  { %1466 = vst.msk [vmem:[%s1863_s5 + $0x68] sm:$0xff] %vm24_vm0, %v1625_v18  ;;  %1467 = vst.msk [vmem:[%s1863_s5 + $0x70] sm:$0xff] %vm24_vm0, %v1625_v18 }
  0x35   :  { %1589 = vmatpush3.bf16.xpose.msra.mxu0 %v1586_v21  ;;  %1608 = vmatpush3.bf16.xpose.msra.mxu1 %v1586_v21  ;;  %1468 = vst.msk [vmem:[%s1863_s5 + $0x78] sm:$0xff] %vm24_vm0, %v1625_v18 }
  0x36   :  { %1591 = vmatprep.subr.bf16.mxu0 %v1590_v24  ;;  %1601 = vmatprep.subr.bf16.mxu1 %v1590_v24 }
  0x3d   :  { %1593 = vmatpush3.bf16.xpose.msra.mxu0 %v1590_v24  ;;  %1609 = vmatpush3.bf16.xpose.msra.mxu1 %v1590_v24 }
  0x44   :  { %1539 = vmatmul.mubr.f32.vlgmr.msra.gmra.mrb[0].mxu0 %v74_v25  ;;  %1551 = vmatmul.mubr.f32.vlgmr.msra.gmra.mrb[0].mxu1 %v82_v31  ;;  %v264_v25 = vld [vmem:[#allocation2 + $0x70] sm:$0xff] }
  0x45   :  { %1541 = vmatprep.mubr.f32.mxu0 %v75_v26  ;;  %1553 = vmatprep.mubr.f32.mxu1 %v83_v32  ;;  %v253_v32 = vld [vmem:[#allocation2 + $0x18] sm:$0xff] }
  0x48   :  { %1542 = vmatmul.mubr.f32.gmra.mrb[2].mxu0 %v76_v27  ;;  %1554 = vmatmul.mubr.f32.gmra.mrb[2].mxu1 %v84_v35  ;;  %v254_v35 = vld [vmem:[#allocation2 + $0x20] sm:$0xff] }
  0x49   :  { %1544 = vmatprep.mubr.f32.mxu0 %v77_v28  ;;  %1556 = vmatprep.mubr.f32.mxu1 %v85_v36 }
  0x4c   :  { %1545 = vmatmul.mubr.f32.gmra.mrb[4].mxu0 %v78_v33  ;;  %1557 = vmatmul.mubr.f32.gmra.mrb[4].mxu1 %v86_v38  ;;  %v255_v38 = vld [vmem:[#allocation2 + $0x28] sm:$0xff] }
  0x4d   :  { %1547 = vmatprep.mubr.f32.mxu0 %v79_v34  ;;  %1559 = vmatprep.mubr.f32.mxu1 %v87_v39 }
  0x50   :  { %1548 = vmatmul.mubr.f32.gmra.mrb[6].mxu0 %v80_v37  ;;  %1560 = vmatmul.mubr.f32.gmra.mrb[6].mxu1 %v88_v40 }
 0x117   :  { %v1540_v41 = vpop.f32.mrb[0].mxu0  ;;  %v1552_v57 = vpop.f32.mrb[0].mxu1 }
 0x118   :  { %v171_v42 = vpop.f32.mrb[1].mxu0  ;;  %v211_v58 = vpop.f32.mrb[1].mxu1 }
 0x119   :  { %266 = vmax.xlane.f32.xlu0 %v171_v42 }
 0x11b   :  { %v1543_v51 = vpop.f32.mrb[2].mxu0  ;;  %v1555_v59 = vpop.f32.mrb[2].mxu1 }
 0x11c   :  { %v181_v52 = vpop.f32.mrb[3].mxu0  ;;  %v221_v60 = vpop.f32.mrb[3].mxu1 }
 0x11f   :  { %v1546_v53 = vpop.f32.mrb[4].mxu0  ;;  %v1558_v61 = vpop.f32.mrb[4].mxu1 }
 0x120   :  { %v191_v54 = vpop.f32.mrb[5].mxu0  ;;  %v231_v62 = vpop.f32.mrb[5].mxu1 }
 0x123   :  { %v1549_v55 = vpop.f32.mrb[6].mxu0  ;;  %v1561_v63 = vpop.f32.mrb[6].mxu1 }
 0x124   :  { %v201_v56 = vpop.f32.mrb[7].mxu0  ;;  %v241_v0 = vpop.f32.mrb[7].mxu1 }
 0x1a6   :  { %v267_v45 = vpop.xlane.xlu0 %266 }
 0x1a7   :  { %v298_v46 = vmax.f32 %v250_v44, %v267_v45  ;;  %v257_v45 = vld [vmem:[#allocation2 + $0x38] sm:$0xff] }
 0x1a9   :  { %v314_v47 = vsub.f32 %v250_v44, %v298_v46  ;;  %491 = vst.msk [vmem:[#allocation2] sm:$0xff] %vm24_vm0, %v298_v46  ;;  %364 = vperm.xlu0 %1613, %v298_v46   ;;  %v1325_v44 = vld [vmem:[%s1864_s4] sm:$0xff] }
 0x1ab   :  { %v330_v48 = vmul.f32 1.442695, %v314_v47 }
 0x1ad   :  { %1615 = vpow2.f32 %v330_v48 }
 0x1b7   :  { %v1616_v49 = vpop.eup %1615 }
 0x1b8   :  { %695 = vperm.xlu1 %1614, %v1616_v49  }
 0x1bc   :  { %525 = vperm.xlu1 %1614, %v507_v50   ;;  %v258_v50 = vld [vmem:[#allocation2 + $0x40] sm:$0xff] }
 0x1c8   :  { %268 = vmax.xlane.f32.xlu0 %v1540_v41  ;;  %v256_v41 = vld [vmem:[#allocation2 + $0x30] sm:$0xff] }
 0x1cc   :  { %286 = vmax.xlane.f32.xlu0 %v221_v60 }
 0x1d0   :  { %290 = vmax.xlane.f32.xlu0 %v231_v62 }
 0x1d4   :  { %294 = vmax.xlane.f32.xlu0 %v241_v0 }
 0x228   :  { %v365_v6 = vpop.permute.xlu0 %364 }
 0x229   :  { %v442_v8 = vsub.f32 %v171_v42, %v365_v6  ;;  %v265_v6 = vld [vmem:[#allocation2 + $0x78] sm:$0xff] }
 0x22b   :  { %v458_v9 = vmul.f32 1.442695, %v442_v8 }
 0x22d   :  { %1617 = vpow2.f32 %v458_v9 }
 0x22e   :  { %1619 = vrcp.f32 %v1325_v44 }
 0x237   :  { %v696_v2 = vpop.permute.xlu1 %695  ;;  %v1618_v11 = vpop.eup %1617 }
 0x238   :  { %v773_v13 = vmul.f32 0.0, %v696_v2  ;;  %v789_v16 = vsel %vm661_vm5, %v1618_v11, 0.0 }
 0x23a   :  { %v805_v17 = vadd.f32 %v789_v16, %v773_v13 }
 0x23b   :  { %v526_v5 = vpop.permute.xlu1 %525 }
 0x23c   :  { %vm576_vm1 = vcmp.eq.s32.totalorder %v526_v5, %v1473_v4 }
 0x23d   :  { %vm837_vm3 = vmand %vm576_vm1, %vm642_vm2 }
 0x23e   :  { %v869_v7 = vsel %vm837_vm3, %v171_v42, 0.0 }
 0x23f   :  { %1245 = vadd.xlane.f32.xlu1 %v869_v7 }
 0x243   :  { %270 = vmax.xlane.f32.xlu1 %v181_v52 }
 0x247   :  { %272 = vmax.xlane.f32.xlu1 %v1543_v51 }
 0x24b   :  { %274 = vmax.xlane.f32.xlu1 %v191_v54  ;;  %v1620_v54 = vpop.eup %1619 }
 0x24f   :  { %276 = vmax.xlane.f32.xlu1 %v1546_v53  ;;  %v259_v53 = vld [vmem:[#allocation2 + $0x48] sm:$0xff] }
 0x253   :  { %278 = vmax.xlane.f32.xlu1 %v201_v56 }
 0x255   :  { %v269_v14 = vpop.xlane.xlu0 %268 }
 0x256   :  { %v299_v15 = vmax.f32 %v251_v12, %v269_v14 }
 0x257   :  { %280 = vmax.xlane.f32.xlu1 %v1549_v55 }
 0x258   :  { %492 = vst.msk [vmem:[#allocation2 + $0x8] sm:$0xff] %vm24_vm0, %v299_v15 }
 0x259   :  { %v287_v20 = vpop.xlane.xlu0 %286 }
 0x25a   :  { %v308_v21 = vmax.f32 %v260_v19, %v287_v20 }
 0x25b   :  { %1197 = vadd.xlane.f32.xlu1 %v805_v17 }
 0x25c   :  { %501 = vst.msk [vmem:[#allocation2 + $0x50] sm:$0xff] %vm24_vm0, %v308_v21 }
 0x25d   :  { %v291_v23 = vpop.xlane.xlu0 %290 }
 0x25e   :  { %v310_v24 = vmax.f32 %v262_v22, %v291_v23 }
 0x25f   :  { %282 = vmax.xlane.f32.xlu1 %v211_v58  ;;  %v261_v58 = vld [vmem:[#allocation2 + $0x58] sm:$0xff] }
 0x260   :  { %503 = vst.msk [vmem:[#allocation2 + $0x60] sm:$0xff] %vm24_vm0, %v310_v24 }
 0x261   :  { %v295_v26 = vpop.xlane.xlu0 %294 }
 0x262   :  { %v312_v27 = vmax.f32 %v264_v25, %v295_v26 }
 0x263   :  { %284 = vmax.xlane.f32.xlu1 %v1552_v57 }
 0x264   :  { %505 = vst.msk [vmem:[#allocation2 + $0x70] sm:$0xff] %vm24_vm0, %v312_v27 }
 0x267   :  { %288 = vmax.xlane.f32.xlu1 %v1555_v59 }
 0x26b   :  { %292 = vmax.xlane.f32.xlu1 %v1558_v61  ;;  %v1373_v61 = vld [vmem:[#allocation2] sm:$0xff] }
 0x26f   :  { %296 = vmax.xlane.f32.xlu1 %v1561_v63 }
 0x2cc   :  { %v1246_v28 = vpop.xlane.xlu1 %1245 }
 0x2cd   :  { %v1342_v57 = vmul.f32 %v1620_v54, %v1246_v28 }
 0x2cf   :  { %v1389_v63 = vsub.f32 %v1342_v57, %v1373_v61 }
 0x2d0   :  { %v271_v30 = vpop.xlane.xlu1 %270 }
 0x2d1   :  { %v300_v31 = vmax.f32 %v252_v29, %v271_v30 }
 0x2d3   :  { %493 = vst.msk [vmem:[#allocation2 + $0x10] sm:$0xff] %vm24_vm0, %v300_v31 }
 0x2d4   :  { %v273_v33 = vpop.xlane.xlu1 %272 }
 0x2d5   :  { %v301_v34 = vmax.f32 %v253_v32, %v273_v33 }
 0x2d7   :  { %494 = vst.msk [vmem:[#allocation2 + $0x18] sm:$0xff] %vm24_vm0, %v301_v34 }
 0x2d8   :  { %v275_v36 = vpop.xlane.xlu1 %274 }
 0x2d9   :  { %v302_v37 = vmax.f32 %v254_v35, %v275_v36 }
 0x2db   :  { %495 = vst.msk [vmem:[#allocation2 + $0x20] sm:$0xff] %vm24_vm0, %v302_v37 }
 0x2dc   :  { %v277_v39 = vpop.xlane.xlu1 %276 }
 0x2dd   :  { %v303_v40 = vmax.f32 %v255_v38, %v277_v39 }
 0x2df   :  { %496 = vst.msk [vmem:[#allocation2 + $0x28] sm:$0xff] %vm24_vm0, %v303_v40 }
 0x2e0   :  { %v279_v42 = vpop.xlane.xlu1 %278 }
 0x2e1   :  { %v304_v43 = vmax.f32 %v256_v41, %v279_v42 }
 0x2e3   :  { %497 = vst.msk [vmem:[#allocation2 + $0x30] sm:$0xff] %vm24_vm0, %v304_v43 }
 0x2e4   :  { %v281_v46 = vpop.xlane.xlu1 %280 }
 0x2e5   :  { %v305_v47 = vmax.f32 %v257_v45, %v281_v46 }
 0x2e7   :  { %498 = vst.msk [vmem:[#allocation2 + $0x38] sm:$0xff] %vm24_vm0, %v305_v47 }
 0x2e8   :  { %v1198_v48 = vpop.xlane.xlu1 %1197 }
 0x2e9   :  { %v1277_v49 = vadd.f32 1e-12, %v1198_v48 }
 0x2eb   :  { %1621 = vlog2.f32 %v1277_v49 }
 0x2ec   :  { %v283_v51 = vpop.xlane.xlu1 %282 }
 0x2ed   :  { %v306_v52 = vmax.f32 %v258_v50, %v283_v51 }
 0x2ef   :  { %499 = vst.msk [vmem:[#allocation2 + $0x40] sm:$0xff] %vm24_vm0, %v306_v52 }
 0x2f0   :  { %v285_v55 = vpop.xlane.xlu1 %284 }
 0x2f1   :  { %v307_v56 = vmax.f32 %v259_v53, %v285_v55 }
 0x2f3   :  { %500 = vst.msk [vmem:[#allocation2 + $0x48] sm:$0xff] %vm24_vm0, %v307_v56 }
 0x2f4   :  { %v289_v59 = vpop.xlane.xlu1 %288 }
 0x2f5   :  { %v1622_v60 = vpop.eup %1621  ;;  %v309_v62 = vmax.f32 %v261_v58, %v289_v59 }
 0x2f6   :  { %v1294_v0 = vmul.f32 0.6931472, %v1622_v60 }
 0x2f7   :  { %502 = vst.msk [vmem:[#allocation2 + $0x58] sm:$0xff] %vm24_vm0, %v309_v62 }
 0x2f8   :  { %v1405_v2 = vsub.f32 %v1389_v63, %v1294_v0  ;;  %v293_v3 = vpop.xlane.xlu1 %292 }
 0x2f9   :  { %v311_v4 = vmax.f32 %v263_v1, %v293_v3 }
 0x2fa   :  { %v1421_v5 = vsub.f32 0.0, %v1405_v2 }
 0x2fb   :  { %504 = vst.msk [vmem:[#allocation2 + $0x68] sm:$0xff] %vm24_vm0, %v311_v4 }
 0x2fc   :  { %1453 = vst.msk [vmem:[%s1863_s5] sm:$0xff] %vm24_vm0, %v1421_v5  ;;  %v297_v7 = vpop.xlane.xlu1 %296 }
 0x2fd   :  { %v313_v8 = vmax.f32 %v265_v6, %v297_v7 }
 0x2ff   :  { %506 = vst.msk [vmem:[#allocation2 + $0x78] sm:$0xff] %vm24_vm0, %v313_v8 }

</bundles_post_ra>
